<compile_context>
chip_gen: v6e
topology: v6e:2x2x1
jax: 0.10.0
libtpu: 0.0.40
codegen_flags: <defaults>
</compile_context>

<pallas_src>
import jax
import jax.numpy as jnp
from jax.experimental import pallas as pl
from jax.experimental.pallas import tpu as pltpu

NUM_CLASSES = 225
IN_FEATURES = 768
LANE = 128
C_PAD = ((NUM_CLASSES + LANE - 1) // LANE) * LANE  # 256


def _round_up(x, m):
    return ((x + m - 1) // m) * m


def linear_kernel(x_ref, w_ref, b_ref, o_ref):
    # Cast x to bf16 in-kernel (no-op if the caller already supplies bf16);
    # bf16 x bf16 MXU matmul with f32 accumulation; bias added in f32.
    x = x_ref[...].astype(jnp.bfloat16)
    acc = jnp.dot(x, w_ref[...], preferred_element_type=jnp.float32)
    o_ref[...] = (acc + b_ref[...]).astype(o_ref.dtype)


def _choose_tb(B, block_b):
    """Batch tile size: multiple of 8 rows (f32 sublane) unless it spans the
    whole (tiny) batch; aim for >= 2 grid steps so both v7x TensorCores get
    work; cap at block_b rows so double-buffered tiles stay well under VMEM."""
    if B <= 16:
        return B  # single full-extent block (exempt from the 8-row rule)
    tb = min(block_b, _round_up(pl.cdiv(B, 2), 8))
    return max(tb, 8)


def custom_head_forward(x, w_pad, b_pad, *, num_classes=NUM_CLASSES,
                        block_b=1024, out_dtype=jnp.float32):
    """x: [B, 768] (f32 or bf16), w_pad: [768, 256] bf16, b_pad: [1, 256] f32
    -> [B, num_classes] out_dtype (default f32, matching nn.Linear)."""
    B = x.shape[0]
    C = w_pad.shape[1]

    tb = _choose_tb(B, block_b)
    grid = (pl.cdiv(B, tb),)  # last block may be partial; Pallas masks stores

    flops = 2 * B * IN_FEATURES * C
    bytes_accessed = (
        B * IN_FEATURES * x.dtype.itemsize        # x (read once, in its dtype)
        + IN_FEATURES * C * 2                     # W (bf16, resident -> 1 DMA)
        + C * 4                                   # bias (f32)
        + B * C * jnp.dtype(out_dtype).itemsize   # output
    )

    out_padded = pl.pallas_call(
        linear_kernel,
        out_shape=jax.ShapeDtypeStruct((B, C), out_dtype),
        grid_spec=pltpu.PrefetchScalarGridSpec(
            num_scalar_prefetch=0,
            grid=grid,
            in_specs=[
                # x: one (tb, 768) batch tile per grid step (pipelined DMA).
                pl.BlockSpec((tb, IN_FEATURES), lambda i: (i, 0)),
                # W, bias: resident across the whole grid (same block each step).
                pl.BlockSpec((IN_FEATURES, C), lambda i: (0, 0)),
                pl.BlockSpec((1, C), lambda i: (0, 0)),
            ],
            out_specs=pl.BlockSpec((tb, C), lambda i: (i, 0)),
        ),
        compiler_params=pltpu.CompilerParams(
            # Batch tiles are independent -> shard across TCs on v7x.
            dimension_semantics=("parallel",),
            vmem_limit_bytes=32 * 1024 * 1024,
        ),
        cost_estimate=pl.CostEstimate(
            flops=flops, transcendentals=0, bytes_accessed=bytes_accessed),
    )(x, w_pad, b_pad)

    # Strip the padded classes (225..255) to match nn.Linear's output shape.
    # Callers feeding this straight into softmax/argmax can skip this slice by
    # using init_params(..., pad_bias_value=-1e30) and consuming the lane-dense
    # [B, 256] logits directly.
    return out_padded[:, :num_classes]


def init_params(key, in_features=IN_FEATURES, num_classes=NUM_CLASSES,
                pad_bias_value=0.0):
    """Deterministic init mirroring torch.nn.Linear defaults:
    weight, bias ~ U(-1/sqrt(in_features), 1/sqrt(in_features)).
    Returns (w_pad [768, 256] bf16, b_pad [1, 256] f32, w_t_f32, b_f32)."""
    kw, kb = jax.random.split(key)
    bound = 1.0 / jnp.sqrt(jnp.float32(in_features))
    # PyTorch weight layout is [num_classes, in_features]; store transposed.
    w = jax.random.uniform(
        kw, (num_classes, in_features), jnp.float32, -bound, bound)
    b = jax.random.uniform(kb, (num_classes,), jnp.float32, -bound, bound)

    w_t = jnp.transpose(w)  # [768, 225]
    # Pad the class dimension to 256 for lane-dense MXU tiles / stores.
    w_pad = jnp.zeros((in_features, C_PAD),
                      jnp.float32).at[:, :num_classes].set(w_t)
    b_pad = jnp.full((1, C_PAD), pad_bias_value,
                     jnp.float32).at[0, :num_classes].set(b)
    return w_pad.astype(jnp.bfloat16), b_pad, w_t, b


if __name__ == "__main__":
    key = jax.random.PRNGKey(0)
    k_x, k_p = jax.random.split(key)

    B = 2
    x = jax.random.normal(k_x, (B, IN_FEATURES), jnp.float32)
    w_pad, b_pad, w_t_f32, b_f32 = init_params(k_p)

    out = custom_head_forward(x, w_pad, b_pad)
    out = jax.block_until_ready(out)

    # Reference in float32 (same semantics as torch Linear). Kernel uses bf16
    # operands with f32 accumulation -> loosened tolerance.
    ref = x @ w_t_f32 + b_f32[None, :]
    assert out.shape == (B, NUM_CLASSES)
    assert jnp.allclose(out, ref, atol=2e-2, rtol=2e-2), (
        float(jnp.max(jnp.abs(out - ref))))

    print("KERNEL_OK")
</pallas_src>

<mosaic_0001>
module attributes {stable_mosaic.version = 11 : i64} {
  func.func @linear_kernel(%arg0: i32, %arg1: memref<2x768xf32, #tpu.memory_space<vmem>>, %arg2: memref<768x256xbf16, #tpu.memory_space<vmem>>, %arg3: memref<1x256xf32, #tpu.memory_space<vmem>>, %arg4: memref<2x256xf32, #tpu.memory_space<vmem>>) attributes {dimension_semantics = [#tpu.dimension_semantics<parallel>], iteration_bounds = array<i64: 1>, scalar_prefetch = 0 : i64, scratch_operands = 0 : i64, tpu.core_type = #tpu.core_type<tc>, window_params = [{transform_indices = @transform_0, window_bounds = array<i64: 2, 768>}, {pipeline_mode = #tpu.pipeline_mode<synchronous>, transform_indices = @transform_1, window_bounds = array<i64: 768, 256>}, {pipeline_mode = #tpu.pipeline_mode<synchronous>, transform_indices = @transform_2, window_bounds = array<i64: 1, 256>}, {transform_indices = @transform_3, window_bounds = array<i64: 2, 256>}]} {
    %c0 = arith.constant 0 : index
    %c0_0 = arith.constant 0 : index
    %0 = vector.load %arg1[%c0, %c0_0] : memref<2x768xf32, #tpu.memory_space<vmem>>, vector<2x768xf32>
    %1 = arith.truncf %0 : vector<2x768xf32> to vector<2x768xbf16>
    %c0_1 = arith.constant 0 : index
    %c0_2 = arith.constant 0 : index
    %2 = vector.load %arg2[%c0_1, %c0_2] : memref<768x256xbf16, #tpu.memory_space<vmem>>, vector<768x256xbf16>
    %cst = arith.constant dense<0.000000e+00> : vector<2x256xf32>
    %3 = tpu.matmul %1, %2, %cst {dimension_numbers = #tpu.dot_dimension_numbers<[1], [0], [0], [1], [0, 0, 1, 1], [], []>} : vector<2x768xbf16>, vector<768x256xbf16>, vector<2x256xf32> -> vector<2x256xf32>
    %c0_3 = arith.constant 0 : index
    %c0_4 = arith.constant 0 : index
    %4 = vector.load %arg3[%c0_3, %c0_4] : memref<1x256xf32, #tpu.memory_space<vmem>>, vector<1x256xf32>
    %5 = vector.broadcast %4 : vector<1x256xf32> to vector<2x256xf32>
    %6 = arith.addf %3, %5 : vector<2x256xf32>
    %c0_5 = arith.constant 0 : index
    %c0_6 = arith.constant 0 : index
    %7 = vector.load %arg4[%c0_5, %c0_6] : memref<2x256xf32, #tpu.memory_space<vmem>>, vector<2x256xf32>
    tpu.vector_store %arg4[%c0_5, %c0_6], %6 {strides = array<i32>} : memref<2x256xf32, #tpu.memory_space<vmem>>, vector<2x256xf32>,
    return
  }
  func.func @transform_0(%arg0: i32) -> (i32, i32) {
    %c0_i32 = arith.constant 0 : i32
    %c0_i32_0 = arith.constant 0 : i32
    return %arg0, %c0_i32 : i32, i32
  }
  func.func @transform_1(%arg0: i32) -> (i32, i32) {
    %c0_i32 = arith.constant 0 : i32
    %c0_i32_0 = arith.constant 0 : i32
    %c0_i32_1 = arith.constant 0 : i32
    return %c0_i32, %c0_i32_0 : i32, i32
  }
  func.func @transform_2(%arg0: i32) -> (i32, i32) {
    %c0_i32 = arith.constant 0 : i32
    %c0_i32_0 = arith.constant 0 : i32
    %c0_i32_1 = arith.constant 0 : i32
    return %c0_i32, %c0_i32_0 : i32, i32
  }
  func.func @transform_3(%arg0: i32) -> (i32, i32) {
    %c0_i32 = arith.constant 0 : i32
    %c0_i32_0 = arith.constant 0 : i32
    return %arg0, %c0_i32 : i32, i32
  }
}

</mosaic_0001>

<bundles_post_ra>
// kernel: tpu_custom_call.1
= control target key start
LH: loop header
LB: loop body
LE: loop exit
PB: predicated region body
PF: predicated region fallthrough
CT: control target
= control target key end

     0   :  { %8 = vsyncpa [#allocation3], 0  ;;  %s1185_s0 = inlined_call_operand.hbm [shape: f32[2,768], index: 0, kind: input, shape index: {}]   ;;  %s1186_s1 = inlined_call_operand.hbm [shape: bf16[768,256], index: 1, kind: input, shape index: {}]   ;;  %s1187_s2 = inlined_call_operand.vmem [shape: f32[1,256], index: 2, kind: input, shape index: {}]   ;;  %s1188_s3 = inlined_call_operand.hbm [shape: f32[2,256], index: 3, kind: output, shape index: {}]  }
   0x1   :  { %9 = vsyncpa [#allocation6], 0 }
   0x2   :  { %10 = vsyncpa [#allocation4], 0  ;;  %s1136_s12 = smov [#allocation2]   ;;  %s1137_s14 = smov [#allocation5]  }
   0x3   :  { %s17_s13 = sshll.u32 %s1136_s12, 4  ;;  %s26_s15 = sshll.u32 %s1137_s14, 4  ;;  %s18_s13 = int_to_ptr.vmem [resolvable:$true] %s17_s13  ;;  %s27_s15 = int_to_ptr.vmem [resolvable:$true] %s26_s15 }
   0x4   :  { %s1078_s16 = scalar_lea.vmem %s18_s13, 192  ;;  %p1083_p1 = scmp.lt.s32.totalorder %s18_s13, %s18_s13 }
   0x5   :  { %p1079_p0 = scmp.ne.s32.totalorder %s18_s13, %s1078_s16  ;;  %p1084_p2 = scmp.lt.s32.totalorder %s1078_s16, %s1078_s16 }
   0x7   :  { %p1085_p3 = por %p1084_p2, %p1083_p1 }
   0x9   :  { %p1086_p4 = pnand %p1085_p3, %p1079_p0 }
   0xb   :  { %1089 = shalt.err (!%p1086_p4)
}
   0xc   :  { %20 = dma.hbm_to_vmem [thread:$0]  %s1185_s0, 192, %s18_s13, [#allocation3]  }
   0xd   :  { %s1098_s19 = scalar_lea.vmem %s27_s15, 12288  ;;  %p1103_p6 = scmp.lt.s32.totalorder %s27_s15, %s27_s15 }
   0xe   :  { %p1099_p5 = scmp.ne.s32.totalorder %s27_s15, %s1098_s19  ;;  %p1104_p7 = scmp.lt.s32.totalorder %s1098_s19, %s1098_s19 }
  0x10   :  { %p1105_p8 = por %p1104_p7, %p1103_p6 }
  0x12   :  { %p1106_p9 = pnand %p1105_p8, %p1099_p5 }
  0x14   :  { %1109 = shalt.err (!%p1106_p9)
}
  0x15   :  { %s1138_s20 = smov 128   ;;  %s1139_s21 = smov 8  }
  0x16   :  { %32 = dma.hbm_to_vmem [thread:$0]  %s1186_s1, 12288, %s27_s15, [#allocation6], %s1138_s20, %s1138_s20, %s1139_s21  }
  0x17   :  { %1130 = dma.done.wait [#allocation3], 192  }
  0x18   :  { %1131 = vsyncadd [#allocation3], 4294967104 }
  0x19   :  { %1132 = dma.done.wait [#allocation6], 12288  }
  0x1a   :  { %1133 = vsyncadd [#allocation6], 4294955008  ;;  %v925_v0 = vld [vmem:[#allocation5 + $0x74] ss:$8 sps:$4 sm:$0xff]   ;;  %v927_v1 = vld [vmem:[#allocation5 + $0x70] ss:$8 sps:$4 sm:$0xff]   ;;  %v49_v37 = vlaneseq }
  0x1b   :  { %670 = vmatprep.subr.bf16.mxu0 %v925_v0  ;;  %v928_v2 = vld [vmem:[#allocation5 + $0x174] ss:$8 sps:$4 sm:$0xff]   ;;  %v930_v3 = vld [vmem:[#allocation5 + $0x170] ss:$8 sps:$4 sm:$0xff]   ;;  %v931_v4 = vld [vmem:[#allocation5 + $0x64] ss:$8 sps:$4 sm:$0xff]  }
  0x1c   :  { %671 = vmatpush1.bf16.msra.mxu0 %v927_v1  ;;  %v933_v5 = vld [vmem:[#allocation5 + $0x60] ss:$8 sps:$4 sm:$0xff]   ;;  %711 = vmatprep.subr.bf16.mxu1 %v928_v2  ;;  %v934_v6 = vld [vmem:[#allocation5 + $0x164] ss:$8 sps:$4 sm:$0xff]   ;;  %v937_v8 = vld [vmem:[#allocation5 + $0x54] ss:$8 sps:$4 sm:$0xff]  }
  0x1d   :  { %712 = vmatpush1.bf16.msra.mxu1 %v930_v3  ;;  %672 = vmatprep.subr.bf16.mxu0 %v931_v4  ;;  %v936_v7 = vld [vmem:[#allocation5 + $0x160] ss:$8 sps:$4 sm:$0xff]   ;;  %v939_v9 = vld [vmem:[#allocation5 + $0x50] ss:$8 sps:$4 sm:$0xff]   ;;  %v940_v10 = vld [vmem:[#allocation5 + $0x154] ss:$8 sps:$4 sm:$0xff]  }
  0x1e   :  { %713 = vmatprep.subr.bf16.mxu1 %v934_v6  ;;  %v943_v11 = vld [vmem:[#allocation5 + $0x44] ss:$8 sps:$4 sm:$0xff]   ;;  %v942_v12 = vld [vmem:[#allocation5 + $0x150] ss:$8 sps:$4 sm:$0xff]   ;;  %v945_v14 = vld [vmem:[#allocation5 + $0x40] ss:$8 sps:$4 sm:$0xff]  }
  0x1f   :  { %v946_v13 = vld [vmem:[#allocation5 + $0x144] ss:$8 sps:$4 sm:$0xff]   ;;  %v949_v15 = vld [vmem:[#allocation5 + $0x34] ss:$8 sps:$4 sm:$0xff]   ;;  %v948_v16 = vld [vmem:[#allocation5 + $0x140] ss:$8 sps:$4 sm:$0xff]  }
  0x20   :  { %673 = vmatpush1.bf16.msra.mxu0 %v933_v5  ;;  %v952_v17 = vld [vmem:[#allocation5 + $0x134] ss:$8 sps:$4 sm:$0xff]   ;;  %v951_v18 = vld [vmem:[#allocation5 + $0x30] ss:$8 sps:$4 sm:$0xff]   ;;  %v955_v19 = vld [vmem:[#allocation5 + $0x24] ss:$8 sps:$4 sm:$0xff]  }
  0x21   :  { %674 = vmatprep.subr.bf16.mxu0 %v937_v8  ;;  %714 = vmatpush1.bf16.msra.mxu1 %v936_v7  ;;  %v954_v20 = vld [vmem:[#allocation5 + $0x130] ss:$8 sps:$4 sm:$0xff]   ;;  %v958_v21 = vld [vmem:[#allocation5 + $0x124] ss:$8 sps:$4 sm:$0xff]   ;;  %v957_v22 = vld [vmem:[#allocation5 + $0x20] ss:$8 sps:$4 sm:$0xff]  }
  0x22   :  { %715 = vmatprep.subr.bf16.mxu1 %v940_v10  ;;  %v961_v23 = vld [vmem:[#allocation5 + $0x14] ss:$8 sps:$4 sm:$0xff]   ;;  %v960_v24 = vld [vmem:[#allocation5 + $0x120] ss:$8 sps:$4 sm:$0xff]   ;;  %v963_v26 = vld [vmem:[#allocation5 + $0x10] ss:$8 sps:$4 sm:$0xff]  }
  0x23   :  { %v964_v25 = vld [vmem:[#allocation5 + $0x114] ss:$8 sps:$4 sm:$0xff]   ;;  %v967_v27 = vld [vmem:[#allocation5 + $0x4] ss:$8 sps:$4 sm:$0xff]   ;;  %v966_v28 = vld [vmem:[#allocation5 + $0x110] ss:$8 sps:$4 sm:$0xff]  }
  0x24   :  { %675 = vmatpush1.bf16.msra.mxu0 %v939_v9  ;;  %v970_v29 = vld [vmem:[#allocation5 + $0x104] ss:$8 sps:$4 sm:$0xff]   ;;  %v969_v30 = vld [vmem:[#allocation5] ss:$8 sps:$4 sm:$0xff]   ;;  %v973_v31 = vld [vmem:[#allocation5 + $0xf4] ss:$8 sps:$4 sm:$0xff]  }
  0x25   :  { %676 = vmatprep.subr.bf16.mxu0 %v943_v11  ;;  %716 = vmatpush1.bf16.msra.mxu1 %v942_v12  ;;  %v972_v32 = vld [vmem:[#allocation5 + $0x100] ss:$8 sps:$4 sm:$0xff]   ;;  %v976_v33 = vld [vmem:[#allocation5 + $0x1f4] ss:$8 sps:$4 sm:$0xff]   ;;  %v975_v34 = vld [vmem:[#allocation5 + $0xf0] ss:$8 sps:$4 sm:$0xff]  }
  0x26   :  { %717 = vmatprep.subr.bf16.mxu1 %v946_v13  ;;  %v1140_v35 = vmov 1983009808   ;;  %v979_v38 = vld [vmem:[#allocation5 + $0xe4] ss:$8 sps:$4 sm:$0xff]   ;;  %v978_v39 = vld [vmem:[#allocation5 + $0x1f0] ss:$8 sps:$4 sm:$0xff]  }
  0x27   :  { %v47_v36 = vunpack.c.l.s4 %v1140_v35  ;;  %v982_v40 = vld [vmem:[#allocation5 + $0x1e4] ss:$8 sps:$4 sm:$0xff]   ;;  %v981_v41 = vld [vmem:[#allocation5 + $0xe0] ss:$8 sps:$4 sm:$0xff]   ;;  %v1168_v43 = vshrl.u32 %v49_v37, 7  ;;  %v41_v52 = vld [vmem:[#allocation2] sm:$0xff] }
  0x28   :  { %677 = vmatpush1.bf16.msra.mxu0 %v945_v14  ;;  %v985_v44 = vld [vmem:[#allocation5 + $0xd4] ss:$8 sps:$4 sm:$0xff]   ;;  %v984_v45 = vld [vmem:[#allocation5 + $0x1e0] ss:$8 sps:$4 sm:$0xff]   ;;  %v987_v47 = vld [vmem:[#allocation5 + $0xd0] ss:$8 sps:$4 sm:$0xff]   ;;  %v45_v55 = vcombine.high %v41_v52, %v41_v52 }
  0x29   :  { %678 = vmatprep.subr.bf16.mxu0 %v949_v15  ;;  %718 = vmatpush1.bf16.msra.mxu1 %v948_v16  ;;  %v48_v42 = vunpack.c.0.s8 %v47_v36  ;;  %v988_v46 = vld [vmem:[#allocation5 + $0x1d4] ss:$8 sps:$4 sm:$0xff]   ;;  %v991_v49 = vld [vmem:[#allocation5 + $0xc4] ss:$8 sps:$4 sm:$0xff]   ;;  %v990_v50 = vld [vmem:[#allocation5 + $0x1d0] ss:$8 sps:$4 sm:$0xff]  }
  0x2a   :  { %719 = vmatprep.subr.bf16.mxu1 %v952_v17  ;;  %v994_v51 = vld [vmem:[#allocation5 + $0x1c4] ss:$8 sps:$4 sm:$0xff]   ;;  %v993_v53 = vld [vmem:[#allocation5 + $0xc0] ss:$8 sps:$4 sm:$0xff]   ;;  %v997_v56 = vld [vmem:[#allocation5 + $0xb4] ss:$8 sps:$4 sm:$0xff]  }
  0x2b   :  { %v51_v48 = vsub.s32 %v48_v42, %v1168_v43  ;;  %v996_v57 = vld [vmem:[#allocation5 + $0x1c0] ss:$8 sps:$4 sm:$0xff]   ;;  %v1000_v60 = vld [vmem:[#allocation5 + $0x1b4] ss:$8 sps:$4 sm:$0xff]   ;;  %v999_v61 = vld [vmem:[#allocation5 + $0xb0] ss:$8 sps:$4 sm:$0xff]  }
  0x2c   :  { %679 = vmatpush1.bf16.msra.mxu0 %v951_v18  ;;  %v1003_v0 = vld [vmem:[#allocation5 + $0xa4] ss:$8 sps:$4 sm:$0xff]   ;;  %v1002_v1 = vld [vmem:[#allocation5 + $0x1b0] ss:$8 sps:$4 sm:$0xff]   ;;  %v1005_v4 = vld [vmem:[#allocation5 + $0xa0] ss:$8 sps:$4 sm:$0xff]  }
  0x2d   :  { %680 = vmatprep.subr.bf16.mxu0 %v955_v19  ;;  %720 = vmatpush1.bf16.msra.mxu1 %v954_v20  ;;  %v52_v54 = vrot.slane %v41_v52, %v51_v48  ;;  %v59_v59 = vrot.slane %v45_v55, %v51_v48  ;;  %v1006_v3 = vld [vmem:[#allocation5 + $0x1a4] ss:$8 sps:$4 sm:$0xff]   ;;  %v1009_v5 = vld [vmem:[#allocation5 + $0x94] ss:$8 sps:$4 sm:$0xff]   ;;  %v1008_v6 = vld [vmem:[#allocation5 + $0x1a0] ss:$8 sps:$4 sm:$0xff]  }
  0x2e   :  { %721 = vmatprep.subr.bf16.mxu1 %v958_v21  ;;  %v1012_v7 = vld [vmem:[#allocation5 + $0x194] ss:$8 sps:$4 sm:$0xff]   ;;  %v1011_v8 = vld [vmem:[#allocation5 + $0x90] ss:$8 sps:$4 sm:$0xff]   ;;  %v1015_v9 = vld [vmem:[#allocation5 + $0x84] ss:$8 sps:$4 sm:$0xff]  }
  0x2f   :  { %v60_v58 = vcombine.high %v52_v54, %v52_v54  ;;  %v61_v63 = vcombine.high %v59_v59, %v59_v59  ;;  %v1014_v10 = vld [vmem:[#allocation5 + $0x190] ss:$8 sps:$4 sm:$0xff]   ;;  %v1018_v11 = vld [vmem:[#allocation5 + $0x184] ss:$8 sps:$4 sm:$0xff]   ;;  %v1017_v12 = vld [vmem:[#allocation5 + $0x80] ss:$8 sps:$4 sm:$0xff]   ;;  %v76_v15 = vpack.c.bf16 %v52_v54, %v52_v54  ;;  %v78_v17 = vpack.c.bf16 %v59_v59, %v59_v59 }
  0x30   :  { %681 = vmatpush1.bf16.msra.mxu0 %v957_v22  ;;  %v1023_v13 = vld [vmem:[#allocation5 + $0x274] ss:$8 sps:$4 sm:$0xff]   ;;  %v1020_v14 = vld [vmem:[#allocation5 + $0x180] ss:$8 sps:$4 sm:$0xff]   ;;  %v1021_v16 = vld [vmem:[#allocation5 + $0x270] ss:$8 sps:$4 sm:$0xff]  }
  0x31   :  { %682 = vmatprep.subr.bf16.mxu0 %v961_v23  ;;  %722 = vmatpush1.bf16.msra.mxu1 %v960_v24  ;;  %v77_v62 = vpack.c.bf16 %v60_v58, %v60_v58  ;;  %v79_v2 = vpack.c.bf16 %v61_v63, %v61_v63  ;;  %v1027_v18 = vld [vmem:[#allocation5 + $0x264] ss:$8 sps:$4 sm:$0xff]   ;;  %v1171_v19 = vld.sshfl [vmem:[#allocation2 + $0x8] sm:$0x33 pattern:$0x76325410] }
  0x32   :  { %723 = vmatprep.subr.bf16.mxu1 %v964_v25  ;;  %v69_v20 = vcombine.high %v1171_v19, %v1171_v19  ;;  %v1025_v21 = vld [vmem:[#allocation5 + $0x260] ss:$8 sps:$4 sm:$0xff]   ;;  %v1030_v23 = vld [vmem:[#allocation5 + $0x254] ss:$8 sps:$4 sm:$0xff]   ;;  %v1028_v24 = vld [vmem:[#allocation5 + $0x250] ss:$8 sps:$4 sm:$0xff]   ;;  %v80_v52 = vpack.c.bf16 %v1171_v19, %v1171_v19 }
  0x33   :  { %702 = vmatprep.mubr.bf16.mxu0 %v77_v62  ;;  %743 = vmatprep.mubr.bf16.mxu1 %v79_v2  ;;  %v1033_v25 = vld [vmem:[#allocation5 + $0x244] ss:$8 sps:$4 sm:$0xff]   ;;  %v1048_v35 = vld [vmem:[#allocation5 + $0x2f4] ss:$8 sps:$4 sm:$0xff]   ;;  %v1046_v36 = vld [vmem:[#allocation5 + $0x2f0] ss:$8 sps:$4 sm:$0xff]  }
  0x34   :  { %683 = vmatpush1.bf16.msra.mxu0 %v963_v26  ;;  %v81_v22 = vpack.c.bf16 %v69_v20, %v69_v20  ;;  %v1031_v26 = vld [vmem:[#allocation5 + $0x240] ss:$8 sps:$4 sm:$0xff]   ;;  %v1051_v37 = vld [vmem:[#allocation5 + $0x2e4] ss:$8 sps:$4 sm:$0xff]   ;;  %v1066_v48 = vld [vmem:[#allocation5 + $0x294] ss:$8 sps:$4 sm:$0xff]  }
  0x35   :  { %684 = vmatprep.subr.bf16.mxu0 %v967_v27  ;;  %724 = vmatpush1.bf16.msra.mxu1 %v966_v28  ;;  %v1036_v27 = vld [vmem:[#allocation5 + $0x234] ss:$8 sps:$4 sm:$0xff]   ;;  %v1034_v28 = vld [vmem:[#allocation5 + $0x230] ss:$8 sps:$4 sm:$0xff]   ;;  %v1055_v42 = vld [vmem:[#allocation5 + $0x2c0] ss:$8 sps:$4 sm:$0xff]  }
  0x36   :  { %725 = vmatprep.subr.bf16.mxu1 %v970_v29  ;;  %v1039_v29 = vld [vmem:[#allocation5 + $0x224] ss:$8 sps:$4 sm:$0xff]   ;;  %v186_v62 = vsub.s32 1, %v1168_v43  ;;  %v178_v63 = vld [vmem:[%s1187_s2] sm:$0x3]  ;;  %s1141_s24 = smov [#allocation7]  }
  0x37   :  { %s811_s25 = sshll.u32 %s1141_s24, 4  ;;  %s812_s25 = int_to_ptr.vmem [resolvable:$true] %s811_s25 }
  0x38   :  { %685 = vmatpush1.bf16.msra.mxu0 %v969_v30  ;;  %v1037_v30 = vld [vmem:[#allocation5 + $0x220] ss:$8 sps:$4 sm:$0xff]   ;;  %s1110_s26 = scalar_lea.vmem %s812_s25, 64  ;;  %p1115_p11 = scmp.lt.s32.totalorder %s812_s25, %s812_s25 }
  0x39   :  { %686 = vmatprep.subr.bf16.mxu0 %v973_v31  ;;  %726 = vmatpush1.bf16.msra.mxu1 %v972_v32  ;;  %v1042_v31 = vld [vmem:[#allocation5 + $0x214] ss:$8 sps:$4 sm:$0xff]   ;;  %v1040_v32 = vld [vmem:[#allocation5 + $0x210] ss:$8 sps:$4 sm:$0xff]   ;;  %p1111_p10 = scmp.ne.s32.totalorder %s812_s25, %s1110_s26  ;;  %p1116_p12 = scmp.lt.s32.totalorder %s1110_s26, %s1110_s26 }
  0x3a   :  { %727 = vmatprep.subr.bf16.mxu1 %v976_v33  ;;  %v1045_v33 = vld [vmem:[#allocation5 + $0x204] ss:$8 sps:$4 sm:$0xff]  }
  0x3b   :  { %p1117_p13 = por %p1116_p12, %p1115_p11 }
  0x3c   :  { %687 = vmatpush2.bf16.msra.mxu0 %v975_v34  ;;  %v1043_v34 = vld [vmem:[#allocation5 + $0x200] ss:$8 sps:$4 sm:$0xff]  }
  0x3d   :  { %688 = vmatprep.subr.bf16.mxu0 %v979_v38  ;;  %728 = vmatpush2.bf16.msra.mxu1 %v978_v39  ;;  %v1049_v38 = vld [vmem:[#allocation5 + $0x2e0] ss:$8 sps:$4 sm:$0xff]   ;;  %v1054_v39 = vld [vmem:[#allocation5 + $0x2d4] ss:$8 sps:$4 sm:$0xff]   ;;  %p1118_p0 = pnand %p1117_p13, %p1111_p10 }
  0x3e   :  { %729 = vmatprep.subr.bf16.mxu1 %v982_v40  ;;  %v1052_v40 = vld [vmem:[#allocation5 + $0x2d0] ss:$8 sps:$4 sm:$0xff]  }
  0x40   :  { %689 = vmatpush2.bf16.msra.mxu0 %v981_v41  ;;  %v1057_v41 = vld [vmem:[#allocation5 + $0x2c4] ss:$8 sps:$4 sm:$0xff]  }
  0x41   :  { %690 = vmatprep.subr.bf16.mxu0 %v985_v44  ;;  %730 = vmatpush2.bf16.msra.mxu1 %v984_v45  ;;  %v1060_v44 = vld [vmem:[#allocation5 + $0x2b4] ss:$8 sps:$4 sm:$0xff]   ;;  %v1058_v45 = vld [vmem:[#allocation5 + $0x2b0] ss:$8 sps:$4 sm:$0xff]  }
  0x42   :  { %731 = vmatprep.subr.bf16.mxu1 %v988_v46  ;;  %v1063_v46 = vld [vmem:[#allocation5 + $0x2a4] ss:$8 sps:$4 sm:$0xff]  }
  0x44   :  { %691 = vmatpush2.bf16.msra.mxu0 %v987_v47  ;;  %v1061_v47 = vld [vmem:[#allocation5 + $0x2a0] ss:$8 sps:$4 sm:$0xff]  }
  0x45   :  { %692 = vmatprep.subr.bf16.mxu0 %v991_v49  ;;  %732 = vmatpush2.bf16.msra.mxu1 %v990_v50  ;;  %v1064_v49 = vld [vmem:[#allocation5 + $0x290] ss:$8 sps:$4 sm:$0xff]   ;;  %v1069_v50 = vld [vmem:[#allocation5 + $0x284] ss:$8 sps:$4 sm:$0xff]  }
  0x46   :  { %733 = vmatprep.subr.bf16.mxu1 %v994_v51  ;;  %v1067_v51 = vld [vmem:[#allocation5 + $0x280] ss:$8 sps:$4 sm:$0xff]  }
  0x48   :  { %693 = vmatpush2.bf16.msra.mxu0 %v993_v53 }
  0x49   :  { %694 = vmatprep.subr.bf16.mxu0 %v997_v56  ;;  %734 = vmatpush2.bf16.msra.mxu1 %v996_v57 }
  0x4a   :  { %735 = vmatprep.subr.bf16.mxu1 %v1000_v60 }
  0x4c   :  { %695 = vmatpush2.bf16.msra.mxu0 %v999_v61  ;;  %v182_v61 = vsub.s32 0, %v1168_v43 }
  0x4d   :  { %696 = vmatprep.subr.bf16.mxu0 %v1003_v0  ;;  %736 = vmatpush2.bf16.msra.mxu1 %v1002_v1  ;;  %v187_v1 = vrot.slane %v178_v63, %v186_v62 }
  0x4e   :  { %737 = vmatprep.subr.bf16.mxu1 %v1006_v3  ;;  %v183_v0 = vrot.slane %v178_v63, %v182_v61 }
  0x50   :  { %697 = vmatpush2.bf16.msra.mxu0 %v1005_v4 }
  0x51   :  { %698 = vmatprep.subr.bf16.mxu0 %v1009_v5  ;;  %738 = vmatpush2.bf16.msra.mxu1 %v1008_v6 }
  0x52   :  { %739 = vmatprep.subr.bf16.mxu1 %v1012_v7 }
  0x54   :  { %699 = vmatpush2.bf16.msra.mxu0 %v1011_v8 }
  0x55   :  { %700 = vmatprep.subr.bf16.mxu0 %v1015_v9  ;;  %740 = vmatpush2.bf16.msra.mxu1 %v1014_v10 }
  0x56   :  { %741 = vmatprep.subr.bf16.mxu1 %v1018_v11 }
  0x58   :  { %701 = vmatpush2.bf16.msra.mxu0 %v1017_v12 }
  0x59   :  { %752 = vmatprep.subr.bf16.mxu0 %v1023_v13  ;;  %742 = vmatpush2.bf16.msra.mxu1 %v1020_v14 }
  0x5b   :  { %703 = vmatmul.mubr.bf16.vlgmr.msra.gmra.mxu0 %v76_v15 }
  0x5c   :  { %753 = vmatpush1.bf16.msra.mxu0 %v1021_v16  ;;  %744 = vmatmul.mubr.bf16.vlgmr.msra.gmra.mxu1 %v78_v17 }
  0x5d   :  { %754 = vmatprep.subr.bf16.mxu0 %v1027_v18  ;;  %784 = vmatprep.mubr.bf16.mxu0 %v81_v22 }
  0x60   :  { %755 = vmatpush1.bf16.msra.mxu0 %v1025_v21 }
  0x61   :  { %756 = vmatprep.subr.bf16.mxu0 %v1030_v23 }
  0x64   :  { %757 = vmatpush1.bf16.msra.mxu0 %v1028_v24 }
  0x65   :  { %758 = vmatprep.subr.bf16.mxu0 %v1033_v25 }
  0x68   :  { %759 = vmatpush1.bf16.msra.mxu0 %v1031_v26 }
  0x69   :  { %760 = vmatprep.subr.bf16.mxu0 %v1036_v27 }
  0x6c   :  { %761 = vmatpush1.bf16.msra.mxu0 %v1034_v28 }
  0x6d   :  { %762 = vmatprep.subr.bf16.mxu0 %v1039_v29 }
  0x70   :  { %763 = vmatpush1.bf16.msra.mxu0 %v1037_v30 }
  0x71   :  { %764 = vmatprep.subr.bf16.mxu0 %v1042_v31 }
  0x74   :  { %765 = vmatpush1.bf16.msra.mxu0 %v1040_v32 }
  0x75   :  { %766 = vmatprep.subr.bf16.mxu0 %v1045_v33 }
  0x78   :  { %767 = vmatpush1.bf16.msra.mxu0 %v1043_v34 }
  0x79   :  { %768 = vmatprep.subr.bf16.mxu0 %v1048_v35 }
  0x7c   :  { %769 = vmatpush2.bf16.msra.mxu0 %v1046_v36 }
  0x7d   :  { %770 = vmatprep.subr.bf16.mxu0 %v1051_v37 }
  0x80   :  { %771 = vmatpush2.bf16.msra.mxu0 %v1049_v38 }
  0x81   :  { %772 = vmatprep.subr.bf16.mxu0 %v1054_v39 }
  0x84   :  { %773 = vmatpush2.bf16.msra.mxu0 %v1052_v40 }
  0x85   :  { %774 = vmatprep.subr.bf16.mxu0 %v1057_v41 }
  0x88   :  { %775 = vmatpush2.bf16.msra.mxu0 %v1055_v42 }
  0x89   :  { %776 = vmatprep.subr.bf16.mxu0 %v1060_v44 }
  0x8c   :  { %777 = vmatpush2.bf16.msra.mxu0 %v1058_v45 }
  0x8d   :  { %778 = vmatprep.subr.bf16.mxu0 %v1063_v46 }
  0x90   :  { %779 = vmatpush2.bf16.msra.mxu0 %v1061_v47 }
  0x91   :  { %780 = vmatprep.subr.bf16.mxu0 %v1066_v48 }
  0x94   :  { %781 = vmatpush2.bf16.msra.mxu0 %v1064_v49 }
  0x95   :  { %782 = vmatprep.subr.bf16.mxu0 %v1069_v50 }
  0x98   :  { %783 = vmatpush2.bf16.msra.mxu0 %v1067_v51 }
  0x9b   :  { %785 = vmatmul.mubr.bf16.vlgmr.msra.gmra.mxu0 %v80_v52 }
 0x11b   :  { %v704_v53 = vpop.f32.mrf.mxu0 }
 0x11c   :  { %v745_v55 = vpop.f32.mrf.mxu1  ;;  %v705_v2 = vadd.f32 %v704_v53, %v183_v0 }
 0x11d   :  { %v706_v54 = vpop.f32.mrf.mxu0 }
 0x11e   :  { %v747_v57 = vpop.f32.mrf.mxu1  ;;  %v707_v3 = vadd.f32 %v706_v54, %v187_v1  ;;  %v746_v5 = vadd.f32 %v745_v55, %v705_v2 }
 0x11f   :  { %v708_v56 = vpop.f32.mrf.mxu0 }
 0x120   :  { %v749_v59 = vpop.f32.mrf.mxu1  ;;  %v748_v6 = vadd.f32 %v747_v57, %v707_v3 }
 0x121   :  { %v709_v58 = vpop.f32.mrf.mxu0 }
 0x122   :  { %v750_v60 = vpop.f32.mrf.mxu1 }
 0x15b   :  { %v786_v4 = vpop.f32.mrf.mxu0 }
 0x15c   :  { %v787_v8 = vadd.f32 %v786_v4, %v746_v5 }
 0x15d   :  { %v788_v7 = vpop.f32.mrf.mxu0 }
 0x15e   :  { %v789_v9 = vadd.f32 %v788_v7, %v748_v6 }
 0x15f   :  { %v790_v10 = vpop.f32.mrf.mxu0 }
 0x160   :  { %v795_v11 = vcombine.low %v787_v8, %v789_v9 }
 0x161   :  { %v791_v43 = vpop.f32.mrf.mxu0 }
 0x162   :  { %918 = vst.sshfl [vmem:[#allocation7] sm:$0x33 pattern:$0x76325410] %v795_v11 }
 0x163   :  { %1121 = shalt.err (!%p1118_p0)
}
 0x164   :  { %814 = dma.vmem_to_hbm [thread:$0]  %s812_s25, 64, %s1188_s3, [#allocation4]  }
 0x165   :  { %1134 = dma.done.wait [#allocation4], 64  }
 0x166   :  { %1135 = vsyncadd [#allocation4], 4294967232 }
 0x167   :  { %818 = vsyncpa [#allocation3], 1 }
 0x168   :  { %819 = vsyncpa [#allocation6], 1 }
 0x169   :  { %820 = vsyncpa [#allocation4], 1 }

</bundles_post_ra>
